<compile_context>
chip_gen: v6e
topology: v6e:2x2x1
jax: 0.10.0
libtpu: 0.0.40
codegen_flags: <defaults>
</compile_context>

<pallas_src>
import functools

import jax
import jax.numpy as jnp
from jax import lax
from jax.experimental import pallas as pl
from jax.experimental.pallas import tpu as pltpu


# --------------------------------------------------------------------------
# helpers
# --------------------------------------------------------------------------
def _round_up(x, m):
    return ((x + m - 1) // m) * m


def _round_down(x, m):
    return (x // m) * m


def _sublane_align(dtype):
    """Sublane packing of one vreg: 8 rows f32, 16 bf16, 32 int8/bool."""
    itemsize = max(jnp.dtype(dtype).itemsize, 1)
    return 8 * max(4 // itemsize, 1)


def _loss_tile(v_ref, ov_ref, r_ref, clip_eps):
    """Elementwise PPO value loss for one (TB, TS) tile, computed in f32."""
    v = v_ref[...].astype(jnp.float32)
    ov = ov_ref[...].astype(jnp.float32)
    r = r_ref[...].astype(jnp.float32)
    if clip_eps is not None:
        v_clipped = ov + jnp.clip(v - ov, -clip_eps, clip_eps)
        return jnp.maximum((v_clipped - r) ** 2, (v - r) ** 2)
    return (v - r) ** 2


# --------------------------------------------------------------------------
# kernels
# --------------------------------------------------------------------------
def _value_loss_single_pass_kernel(*refs, clip_eps, has_mask, inv_s):
    """TS == S: one block per batch tile, no accumulators, no validity mask.

    Out-of-bounds rows of a partial batch block may compute NaN/Inf; they are
    dropped by Pallas' masked write-back of the (TB, 1) output block.
    """
    if has_mask:
        v_ref, ov_ref, r_ref, m_ref, out_ref = refs
    else:
        v_ref, ov_ref, r_ref, out_ref = refs

    loss = _loss_tile(v_ref, ov_ref, r_ref, clip_eps)

    if has_mask:
        m = m_ref[...].astype(jnp.float32)
        num = jnp.sum(loss * m, axis=-1, keepdims=True)
        den = jnp.sum(m, axis=-1, keepdims=True)
        # Rows whose mask sums to zero yield NaN, same as the reference.
        out_ref[...] = (num / den).astype(out_ref.dtype)
    else:
        out_ref[...] = (jnp.sum(loss, axis=-1, keepdims=True) * inv_s).astype(
            out_ref.dtype)


def _value_loss_multi_pass_kernel(*refs, clip_eps, has_mask, seq_len, ts, ragged):
    """ns > 1 fallback (S too long for a full-row block): accumulate per-row
    sums in VMEM scratch across the sequence grid axis."""
    if has_mask:
        v_ref, ov_ref, r_ref, m_ref, out_ref, num_ref, den_ref = refs
    else:
        v_ref, ov_ref, r_ref, out_ref, num_ref = refs
        den_ref = None

    j = pl.program_id(1)

    @pl.when(j == 0)
    def _init():
        num_ref[...] = jnp.zeros_like(num_ref)
        if has_mask:
            den_ref[...] = jnp.zeros_like(den_ref)

    loss = _loss_tile(v_ref, ov_ref, r_ref, clip_eps)

    if ragged:
        # Only emitted when S % TS != 0: zero out-of-bounds lanes (the padded
        # region of the last partial block may contain garbage / NaN).
        col = j * ts + lax.broadcasted_iota(jnp.int32, loss.shape, 1)
        valid = col < seq_len

    if has_mask:
        m = m_ref[...].astype(jnp.float32)
        if ragged:
            m = jnp.where(valid, m, 0.0)
            loss = jnp.where(valid, loss, 0.0)
        num_ref[...] += jnp.sum(loss * m, axis=-1, keepdims=True)
        den_ref[...] += jnp.sum(m, axis=-1, keepdims=True)
    else:
        if ragged:
            loss = jnp.where(valid, loss, 0.0)
        num_ref[...] += jnp.sum(loss, axis=-1, keepdims=True)

    @pl.when(j == pl.num_programs(1) - 1)
    def _finalize():
        if has_mask:
            out_ref[...] = (num_ref[...] / den_ref[...]).astype(out_ref.dtype)
        else:
            out_ref[...] = (num_ref[...] * (1.0 / float(seq_len))).astype(
                out_ref.dtype)


# --------------------------------------------------------------------------
# wrapper
# --------------------------------------------------------------------------
def value_loss(values, old_values, returns, action_mask=None, clip_eps=None,
               *, tb_max=512, vmem_budget_bytes=None, vmem_limit_bytes=None):
    """Pallas implementation of ValueLoss.forward. Returns a scalar f32."""
    B, S = values.shape
    has_mask = action_mask is not None

    if has_mask and action_mask.dtype == jnp.bool_:
        # Stream the mask narrow (1 byte/elem); int8 lowers robustly.
        action_mask = action_mask.astype(jnp.int8)

    inputs = [values, old_values, returns] + ([action_mask] if has_mask else [])
    sum_bytes = sum(jnp.dtype(x.dtype).itemsize for x in inputs)

    # ---- generation-aware VMEM budget ------------------------------------
    if vmem_budget_bytes is None or vmem_limit_bytes is None:
        try:
            phys = pltpu.get_tpu_info().vmem_capacity_bytes
        except Exception:
            phys = 64 * 1024 * 1024          # conservative (v7x per-TC VMEM)
        if vmem_limit_bytes is None:
            vmem_limit_bytes = min(int(phys * 3 // 4), 96 * 1024 * 1024)
        if vmem_budget_bytes is None:
            # Budget for the double-buffered input blocks only.
            vmem_budget_bytes = min(int(phys // 2), 80 * 1024 * 1024)

    # ---- tile selection ----------------------------------------------------
    align_b = max(_sublane_align(x.dtype) for x in inputs)

    if B <= align_b:
        tb = B                                   # full-extent block is legal
    else:
        # >= 2 batch blocks so the "parallel" axis can split across the two
        # TensorCores on v7x (harmless ~0.35us extra step on v5e/v6e).
        tb = min(_round_up(pl.cdiv(B, 2), align_b), _round_up(tb_max, align_b))

    def block_bytes(tb_, ts_):
        return 2 * tb_ * ts_ * sum_bytes         # double-buffered inputs

    if block_bytes(tb, S) <= vmem_budget_bytes:
        ts = S                                    # full-row blocks, ns = 1
    else:
        tb_fit = _round_down(vmem_budget_bytes // (2 * S * sum_bytes), align_b)
        if tb_fit >= align_b:
            tb = min(tb, tb_fit)                  # shrink TB, keep TS = S
            ts = S
        else:
            # S too long even for one aligned row-tile: tile the sequence.
            tb = align_b if B > align_b else B
            ts_fit = _round_down(vmem_budget_bytes // (2 * tb * sum_bytes), 128)
            ts = max(min(ts_fit, _round_up(S, 128)), 128)

    nb = pl.cdiv(B, tb)
    ns = pl.cdiv(S, ts)

    out_shape = jax.ShapeDtypeStruct((B, 1), jnp.float32)

    if ns == 1:
        kernel = functools.partial(
            _value_loss_single_pass_kernel,
            clip_eps=clip_eps, has_mask=has_mask, inv_s=1.0 / float(S))
        grid = (nb,)
        in_specs = [pl.BlockSpec((tb, S), lambda i: (i, 0)) for _ in inputs]
        out_specs = pl.BlockSpec((tb, 1), lambda i: (i, 0))
        scratch_shapes = []
        dims = ("parallel",)
    else:
        ragged = (S % ts) != 0
        kernel = functools.partial(
            _value_loss_multi_pass_kernel,
            clip_eps=clip_eps, has_mask=has_mask, seq_len=S, ts=ts,
            ragged=ragged)
        grid = (nb, ns)
        in_specs = [pl.BlockSpec((tb, ts), lambda i, j: (i, j)) for _ in inputs]
        out_specs = pl.BlockSpec((tb, 1), lambda i, j: (i, 0))
        scratch_shapes = [pltpu.VMEM((tb, 1), jnp.float32)]
        if has_mask:
            scratch_shapes.append(pltpu.VMEM((tb, 1), jnp.float32))
        dims = ("parallel", "arbitrary")

    per_row = pl.pallas_call(
        kernel,
        out_shape=out_shape,
        grid_spec=pltpu.PrefetchScalarGridSpec(
            num_scalar_prefetch=0,
            grid=grid,
            in_specs=in_specs,
            out_specs=out_specs,
            scratch_shapes=scratch_shapes,
        ),
        compiler_params=pltpu.CompilerParams(
            dimension_semantics=dims,
            vmem_limit_bytes=vmem_limit_bytes,
        ),
    )(*inputs)

    # Tiny final reduce over B rows stays in XLA; matches
    # `0.5 * masked_mean(loss, mask, dim=-1).mean()`.
    return 0.5 * jnp.mean(per_row[:, 0])


# --------------------------------------------------------------------------
# pure-JAX reference (mirrors the PyTorch module, f32 math)
# --------------------------------------------------------------------------
def _reference_value_loss(values, old_values, returns, action_mask, clip_eps):
    values = values.astype(jnp.float32)
    old_values = old_values.astype(jnp.float32)
    returns = returns.astype(jnp.float32)
    if clip_eps is not None:
        v_clipped = old_values + jnp.clip(values - old_values, -clip_eps, clip_eps)
        loss = jnp.maximum((v_clipped - returns) ** 2, (values - returns) ** 2)
    else:
        loss = (values - returns) ** 2
    if action_mask is None:
        per_row = loss.mean(axis=-1)
    else:
        m = action_mask.astype(loss.dtype)
        per_row = (loss * m).sum(axis=-1) / m.sum(axis=-1)
    return 0.5 * per_row.mean()


if __name__ == "__main__":
    key = jax.random.PRNGKey(0)

    # ---------- small case (single tile), matching the module's spec -------
    B, S = 2, 8
    k1, k2, k3 = jax.random.split(key, 3)
    values = jax.random.normal(k1, (B, S), dtype=jnp.float32)
    old_values = jax.random.normal(k2, (B, S), dtype=jnp.float32)
    returns = jax.random.normal(k3, (B, S), dtype=jnp.float32)
    action_mask = jnp.array(
        [[1, 1, 1, 1, 1, 0, 0, 0],
         [1, 1, 1, 1, 1, 1, 1, 0]], dtype=jnp.float32)

    out = jax.block_until_ready(
        value_loss(values, old_values, returns, action_mask, clip_eps=0.2))
    ref = _reference_value_loss(values, old_values, returns, action_mask, 0.2)
    assert jnp.allclose(out, ref, rtol=1e-5, atol=1e-6), (out, ref)

    # narrow (bool -> int8) mask path
    mask_bool = action_mask > 0
    out_b = jax.block_until_ready(
        value_loss(values, old_values, returns, mask_bool, clip_eps=0.2))
    assert jnp.allclose(out_b, ref, rtol=1e-5, atol=1e-6), (out_b, ref)

    # no-mask / no-clip path (streams only 3 arrays, divides by constant S)
    out2 = jax.block_until_ready(
        value_loss(values, old_values, returns, None, clip_eps=None))
    ref2 = _reference_value_loss(values, old_values, returns, None, None)
    assert jnp.allclose(out2, ref2, rtol=1e-5, atol=1e-6), (out2, ref2)

    # native-dtype (bf16) inputs with an int8 mask: f32 math in-kernel only
    v_bf = values.astype(jnp.bfloat16)
    ov_bf = old_values.astype(jnp.bfloat16)
    r_bf = returns.astype(jnp.bfloat16)
    m_i8 = action_mask.astype(jnp.int8)
    out3 = jax.block_until_ready(
        value_loss(v_bf, ov_bf, r_bf, m_i8, clip_eps=0.2))
    ref3 = _reference_value_loss(v_bf, ov_bf, r_bf, action_mask, 0.2)
    assert jnp.allclose(out3, ref3, rtol=1e-4, atol=1e-5), (out3, ref3)

    # ---------- multi-block batch axis (full-row blocks, nb >= 2) ----------
    Bt, St = 10, 300
    k4, k5, k6, k7 = jax.random.split(jax.random.PRNGKey(1), 4)
    v_t = jax.random.normal(k4, (Bt, St), dtype=jnp.float32)
    ov_t = jax.random.normal(k5, (Bt, St), dtype=jnp.float32)
    r_t = jax.random.normal(k6, (Bt, St), dtype=jnp.float32)
    m_t = (jax.random.uniform(k7, (Bt, St)) < 0.7).astype(jnp.float32)
    m_t = m_t.at[:, 0].set(1.0)  # every row has at least one valid token

    out4 = jax.block_until_ready(
        value_loss(v_t, ov_t, r_t, m_t, clip_eps=0.1))
    ref4 = _reference_value_loss(v_t, ov_t, r_t, m_t, 0.1)
    assert jnp.allclose(out4, ref4, rtol=1e-5, atol=1e-6), (out4, ref4)

    # ---------- forced multi-pass fallback (tiny VMEM budget) --------------
    # Partial blocks on both axes: TB=8 (nb=2), TS=128 (ns=3, ragged tail).
    out5 = jax.block_until_ready(
        value_loss(v_t, ov_t, r_t, m_t, clip_eps=0.1,
                   vmem_budget_bytes=40_000))
    assert jnp.allclose(out5, ref4, rtol=1e-5, atol=1e-6), (out5, ref4)

    out6 = jax.block_until_ready(
        value_loss(v_t, ov_t, r_t, None, clip_eps=0.1,
                   vmem_budget_bytes=40_000))
    ref6 = _reference_value_loss(v_t, ov_t, r_t, None, 0.1)
    assert jnp.allclose(out6, ref6, rtol=1e-5, atol=1e-6), (out6, ref6)

    print("KERNEL_OK")
</pallas_src>

<mosaic_0001>
module attributes {stable_mosaic.version = 11 : i64} {
  func.func @_value_loss_single_pass_kernel(%arg0: i32, %arg1: memref<2x8xf32, #tpu.memory_space<vmem>>, %arg2: memref<2x8xf32, #tpu.memory_space<vmem>>, %arg3: memref<2x8xf32, #tpu.memory_space<vmem>>, %arg4: memref<2x8xf32, #tpu.memory_space<vmem>>, %arg5: memref<2x1xf32, #tpu.memory_space<vmem>>) attributes {dimension_semantics = [#tpu.dimension_semantics<parallel>], iteration_bounds = array<i64: 1>, scalar_prefetch = 0 : i64, scratch_operands = 0 : i64, tpu.core_type = #tpu.core_type<tc>, window_params = [{transform_indices = @transform_0, window_bounds = array<i64: 2, 8>}, {transform_indices = @transform_1, window_bounds = array<i64: 2, 8>}, {transform_indices = @transform_2, window_bounds = array<i64: 2, 8>}, {transform_indices = @transform_3, window_bounds = array<i64: 2, 8>}, {transform_indices = @transform_4, window_bounds = array<i64: 2, 1>}]} {
    %c0 = arith.constant 0 : index
    %c0_0 = arith.constant 0 : index
    %0 = vector.load %arg1[%c0, %c0_0] : memref<2x8xf32, #tpu.memory_space<vmem>>, vector<2x8xf32>
    %c0_1 = arith.constant 0 : index
    %c0_2 = arith.constant 0 : index
    %1 = vector.load %arg2[%c0_1, %c0_2] : memref<2x8xf32, #tpu.memory_space<vmem>>, vector<2x8xf32>
    %c0_3 = arith.constant 0 : index
    %c0_4 = arith.constant 0 : index
    %2 = vector.load %arg3[%c0_3, %c0_4] : memref<2x8xf32, #tpu.memory_space<vmem>>, vector<2x8xf32>
    %3 = arith.subf %0, %1 : vector<2x8xf32>
    %cst = arith.constant -2.000000e-01 : f32
    %cst_5 = arith.constant 2.000000e-01 : f32
    %4 = vector.broadcast %cst : f32 to vector<2x8xf32>
    %5 = arith.maximumf %4, %3 : vector<2x8xf32>
    %6 = vector.broadcast %cst_5 : f32 to vector<2x8xf32>
    %7 = arith.minimumf %6, %5 : vector<2x8xf32>
    %8 = arith.addf %1, %7 : vector<2x8xf32>
    %9 = arith.subf %8, %2 : vector<2x8xf32>
    %10 = arith.mulf %9, %9 : vector<2x8xf32>
    %11 = arith.subf %0, %2 : vector<2x8xf32>
    %12 = arith.mulf %11, %11 : vector<2x8xf32>
    %13 = arith.maximumf %10, %12 : vector<2x8xf32>
    %c0_6 = arith.constant 0 : index
    %c0_7 = arith.constant 0 : index
    %14 = vector.load %arg4[%c0_6, %c0_7] : memref<2x8xf32, #tpu.memory_space<vmem>>, vector<2x8xf32>
    %15 = arith.mulf %13, %14 : vector<2x8xf32>
    %cst_8 = arith.constant dense<0.000000e+00> : vector<2xf32>
    %16 = vector.multi_reduction <add>, %15, %cst_8 [1] : vector<2x8xf32> to vector<2xf32>
    %17 = vector.shape_cast %16 : vector<2xf32> to vector<2x1xf32>
    %cst_9 = arith.constant dense<0.000000e+00> : vector<2xf32>
    %18 = vector.multi_reduction <add>, %14, %cst_9 [1] : vector<2x8xf32> to vector<2xf32>
    %19 = vector.shape_cast %18 : vector<2xf32> to vector<2x1xf32>
    %20 = arith.divf %17, %19 : vector<2x1xf32>
    %c0_10 = arith.constant 0 : index
    %c0_11 = arith.constant 0 : index
    %21 = vector.load %arg5[%c0_10, %c0_11] : memref<2x1xf32, #tpu.memory_space<vmem>>, vector<2x1xf32>
    tpu.vector_store %arg5[%c0_10, %c0_11], %20 {strides = array<i32>} : memref<2x1xf32, #tpu.memory_space<vmem>>, vector<2x1xf32>,
    return
  }
  func.func @transform_0(%arg0: i32) -> (i32, i32) {
    %c0_i32 = arith.constant 0 : i32
    %c0_i32_0 = arith.constant 0 : i32
    return %arg0, %c0_i32 : i32, i32
  }
  func.func @transform_1(%arg0: i32) -> (i32, i32) {
    %c0_i32 = arith.constant 0 : i32
    %c0_i32_0 = arith.constant 0 : i32
    return %arg0, %c0_i32 : i32, i32
  }
  func.func @transform_2(%arg0: i32) -> (i32, i32) {
    %c0_i32 = arith.constant 0 : i32
    %c0_i32_0 = arith.constant 0 : i32
    return %arg0, %c0_i32 : i32, i32
  }
  func.func @transform_3(%arg0: i32) -> (i32, i32) {
    %c0_i32 = arith.constant 0 : i32
    %c0_i32_0 = arith.constant 0 : i32
    return %arg0, %c0_i32 : i32, i32
  }
  func.func @transform_4(%arg0: i32) -> (i32, i32) {
    %c0_i32 = arith.constant 0 : i32
    %c0_i32_0 = arith.constant 0 : i32
    return %arg0, %c0_i32 : i32, i32
  }
}

</mosaic_0001>

<bundles_post_ra>
// kernel: tpu_custom_call.1
= control target key start
LH: loop header
LB: loop body
LE: loop exit
PB: predicated region body
PF: predicated region fallthrough
CT: control target
= control target key end

     0   :  { %9 = vsyncpa [#allocation3], 0  ;;  %s165_s0 = inlined_call_operand.hbm [shape: f32[2,8], index: 0, kind: input, shape index: {}]   ;;  %s166_s1 = inlined_call_operand.hbm [shape: f32[2,8], index: 1, kind: input, shape index: {}]   ;;  %s167_s2 = inlined_call_operand.vmem [shape: f32[2,8], index: 2, kind: input, shape index: {}]   ;;  %s168_s3 = inlined_call_operand.vmem [shape: f32[2,8], index: 3, kind: input, shape index: {}]   ;;  %s169_s4 = inlined_call_operand.vmem [shape: f32[2,1], index: 4, kind: output, shape index: {}]  }
   0x1   :  { %10 = vsyncpa [#allocation5], 0  ;;  %s121_s15 = smov [#allocation2]   ;;  %s122_s17 = smov [#allocation4]  }
   0x2   :  { %s17_s16 = sshll.u32 %s121_s15, 4  ;;  %s27_s18 = sshll.u32 %s122_s17, 4  ;;  %s18_s16 = int_to_ptr.vmem [resolvable:$true] %s17_s16  ;;  %s28_s18 = int_to_ptr.vmem [resolvable:$true] %s27_s18 }
   0x3   :  { %s85_s19 = scalar_lea.vmem %s18_s16, 32  ;;  %p90_p1 = scmp.lt.s32.totalorder %s18_s16, %s18_s16 }
   0x4   :  { %p86_p0 = scmp.ne.s32.totalorder %s18_s16, %s85_s19  ;;  %p91_p2 = scmp.lt.s32.totalorder %s85_s19, %s85_s19 }
   0x6   :  { %p92_p3 = por %p91_p2, %p90_p1 }
   0x8   :  { %p93_p4 = pnand %p92_p3, %p86_p0 }
   0xa   :  { %96 = shalt.err (!%p93_p4)
}
   0xb   :  { %20 = dma.hbm_to_vmem [thread:$0]  %s165_s0, 32, %s18_s16, [#allocation3]  }
   0xc   :  { %s105_s22 = scalar_lea.vmem %s28_s18, 32  ;;  %p110_p6 = scmp.lt.s32.totalorder %s28_s18, %s28_s18 }
   0xd   :  { %p106_p5 = scmp.ne.s32.totalorder %s28_s18, %s105_s22  ;;  %p111_p7 = scmp.lt.s32.totalorder %s105_s22, %s105_s22 }
   0xf   :  { %p112_p8 = por %p111_p7, %p110_p6 }
  0x11   :  { %p113_p9 = pnand %p112_p8, %p106_p5 }
  0x13   :  { %116 = shalt.err (!%p113_p9)
}
  0x14   :  { %30 = dma.hbm_to_vmem [thread:$0]  %s166_s1, 32, %s28_s18, [#allocation5]  }
  0x15   :  { %117 = dma.done.wait [#allocation3], 32  }
  0x16   :  { %118 = vsyncadd [#allocation3], 4294967264 }
  0x17   :  { %119 = dma.done.wait [#allocation5], 32  }
  0x18   :  { %120 = vsyncadd [#allocation5], 4294967264  ;;  %vm55_vm0 = vcmask 58368   ;;  %v53_v0 = vld [vmem:[%s168_s3] sm:$0x3]  ;;  %vm64_vm1 = vcmask 1024  }
  0x19   :  { %v41_v1 = vld [vmem:[#allocation2] sm:$0x3]  ;;  %v42_v2 = vld [vmem:[#allocation4] sm:$0x3]  ;;  %v59_v3 = vsel %vm55_vm0, %v53_v0, 0.0 }
  0x1a   :  { %v43_v4 = vld [vmem:[%s167_s2] sm:$0x3]  ;;  %v44_v5 = vsub.f32 %v41_v1, %v42_v2  ;;  %60 = vadd.xlane.f32.xlu0 %v59_v3 }
  0x1b   :  { %v50_v7 = vsub.f32 %v41_v1, %v43_v4 }
  0x1c   :  { %v72_v6 = vclamps-f32 %v44_v5, 0.2 }
  0x1d   :  { %v51_v10 = vmul.f32 %v50_v7, %v50_v7 }
  0x1e   :  { %v47_v8 = vadd.f32 %v72_v6, %v42_v2 }
  0x20   :  { %v48_v9 = vsub.f32 %v47_v8, %v43_v4 }
  0x22   :  { %v49_v11 = vmul.f32 %v48_v9, %v48_v9 }
  0x24   :  { %v52_v12 = vmax.f32 %v49_v11, %v51_v10 }
  0x26   :  { %v54_v13 = vmul.f32 %v53_v0, %v52_v12 }
  0x28   :  { %v56_v14 = vsel %vm55_vm0, %v54_v13, 0.0 }
  0x29   :  { %57 = vadd.xlane.f32.xlu0 %v56_v14 }
  0xa3   :  { %v61_v15 = vpop.xlane.xlu0 %60 }
  0xa4   :  { %75 = vrcp.f32 %v61_v15 }
  0xb1   :  { %v76_v16 = vpop.eup %75 }
  0xb2   :  { %v58_v17 = vpop.xlane.xlu0 %57 }
  0xb3   :  { %v63_v18 = vmul.f32 %v76_v16, %v58_v17 }
  0xb5   :  { %65 = vst.msk [vmem:[%s169_s4] sm:$0x3] %vm64_vm1, %v63_v18 }
  0xb6   :  { %70 = vsyncpa [#allocation3], 1 }
  0xb7   :  { %71 = vsyncpa [#allocation5], 1 }

</bundles_post_ra>
